<compile_context>
chip_gen: v5e
topology: v5e:2x2
jax: 0.10.0
libtpu: 0.0.40
codegen_flags: <defaults>
</compile_context>

<pallas_src>
import jax
import jax.numpy as jnp
from jax.experimental import pallas as pl
from jax.experimental.pallas import tpu as pltpu


def _pool_fc_kernel(x_ref, w_ref, b_ref, o_ref):
    # x_ref : (B*C*Hp, 2*W)  each row = the pair of input H-rows of one pooled row
    # w_ref : (2*W, F)       AvgPool2d(2,2) folded into the fc weight (0.25 factor)
    # b_ref : (1, F)         fc bias
    # o_ref : (B*C*Hp, F)
    acc = jnp.dot(x_ref[...], w_ref[...], preferred_element_type=jnp.float32)
    o_ref[...] = (acc + b_ref[...]).astype(o_ref.dtype)


def fuse_pool_fc_params(w_fc, b_fc, W):
    """Fold AvgPool2d(2,2) into Linear(W//2, F) -> small (2*W, F) weight.

    For k = r*W + w (r in {0,1} = which H-row of the pooled pair, w = input col):
        w_small[k, f] = 0.25 * w_fc[w // 2, f]
    Exact because both avg-pooling and the linear layer are linear maps.
    """
    Wp_in, F = w_fc.shape
    assert Wp_in * 2 == W, "fc in_features must equal W // 2"
    # repeat -> row w maps to w_fc[w//2]; tile -> same weights for both H-rows.
    w_small = 0.25 * jnp.tile(
        jnp.repeat(w_fc.astype(jnp.float32), 2, axis=0), (2, 1)
    )  # (2*W, F)
    b2 = b_fc.astype(jnp.float32).reshape(1, F)
    return w_small, b2


def pool_then_fc(x, w_small, b2):
    """x: (B, C, H, W) float32 -> (B, C, H//2, F) float32 via one fused GEMM."""
    B, C, H, W = x.shape
    assert H % 2 == 0 and W % 2 == 0, "AvgPool2d(2,2) fusion assumes even H, W"
    Hp = H // 2
    F = b2.shape[1]
    M = B * C * Hp

    # Free row-major reshape: row (b, c, hp) <- concat(x[b,c,2hp,:], x[b,c,2hp+1,:]).
    x2 = x.reshape(M, 2 * W)

    out2 = pl.pallas_call(
        _pool_fc_kernel,
        out_shape=jax.ShapeDtypeStruct((M, F), jnp.float32),
        # No grid: single invocation, full arrays resident in VMEM, no
        # double-buffering / per-step pipeline overhead (~300 KB total I/O).
        in_specs=[
            pl.BlockSpec(memory_space=pltpu.MemorySpace.VMEM),
            pl.BlockSpec(memory_space=pltpu.MemorySpace.VMEM),
            pl.BlockSpec(memory_space=pltpu.MemorySpace.VMEM),
        ],
        out_specs=pl.BlockSpec(memory_space=pltpu.MemorySpace.VMEM),
    )(x2, w_small, b2)

    return out2.reshape(B, C, Hp, F)


if __name__ == "__main__":
    # Small shapes consistent with the module: NCHW input, fc = Linear(W//2, F).
    B, C, H, W = 2, 4, 16, 16
    F = 32

    key = jax.random.PRNGKey(0)
    kx, kw, kb = jax.random.split(key, 3)
    x = jax.random.normal(kx, (B, C, H, W), dtype=jnp.float32)
    # Deterministic fc parameters (equivalent of nn.Linear(W//2, F)); stored as
    # (in_features, out_features) so the reference does pooled @ W + b.
    w_fc = jax.random.normal(kw, (W // 2, F), dtype=jnp.float32) * 0.1
    b_fc = jax.random.normal(kb, (F,), dtype=jnp.float32) * 0.1

    # One-time parameter fusion (outside the per-call path).
    w_small, b2 = fuse_pool_fc_params(w_fc, b_fc, W)

    out = pool_then_fc(x, w_small, b2)
    out = jax.block_until_ready(out)

    # Pure-JAX reference: AvgPool2d(2,2) then Linear on the last dim.
    pooled_ref = x.reshape(B, C, H // 2, 2, W // 2, 2).mean(axis=(3, 5))
    ref = pooled_ref @ w_fc + b_fc
    assert out.shape == (B, C, H // 2, F)
    assert jnp.allclose(out, ref, atol=1e-4, rtol=1e-4)

    print("KERNEL_OK")
</pallas_src>

<mosaic_0001>
module attributes {stable_mosaic.version = 11 : i64} {
  func.func @_pool_fc_kernel(%arg0: memref<64x32xf32, #tpu.memory_space<vmem>>, %arg1: memref<32x32xf32, #tpu.memory_space<vmem>>, %arg2: memref<1x32xf32, #tpu.memory_space<vmem>>, %arg3: memref<64x32xf32, #tpu.memory_space<vmem>>) attributes {dimension_semantics = [], scalar_prefetch = 0 : i64, scratch_operands = 0 : i64, tpu.core_type = #tpu.core_type<tc>} {
    %c0 = arith.constant 0 : index
    %c0_0 = arith.constant 0 : index
    %0 = vector.load %arg0[%c0, %c0_0] : memref<64x32xf32, #tpu.memory_space<vmem>>, vector<64x32xf32>
    %c0_1 = arith.constant 0 : index
    %c0_2 = arith.constant 0 : index
    %1 = vector.load %arg1[%c0_1, %c0_2] : memref<32x32xf32, #tpu.memory_space<vmem>>, vector<32x32xf32>
    %cst = arith.constant dense<0.000000e+00> : vector<64x32xf32>
    %2 = tpu.matmul %0, %1, %cst {dimension_numbers = #tpu.dot_dimension_numbers<[1], [0], [0], [1], [0, 0, 1, 1], [], []>} : vector<64x32xf32>, vector<32x32xf32>, vector<64x32xf32> -> vector<64x32xf32>
    %c0_3 = arith.constant 0 : index
    %c0_4 = arith.constant 0 : index
    %3 = vector.load %arg2[%c0_3, %c0_4] : memref<1x32xf32, #tpu.memory_space<vmem>>, vector<1x32xf32>
    %4 = vector.broadcast %3 : vector<1x32xf32> to vector<64x32xf32>
    %5 = arith.addf %2, %4 : vector<64x32xf32>
    %c0_5 = arith.constant 0 : index
    %c0_6 = arith.constant 0 : index
    %6 = vector.load %arg3[%c0_5, %c0_6] : memref<64x32xf32, #tpu.memory_space<vmem>>, vector<64x32xf32>
    tpu.vector_store %arg3[%c0_5, %c0_6], %5 {strides = array<i32>} : memref<64x32xf32, #tpu.memory_space<vmem>>, vector<64x32xf32>,
    return
  }
}

</mosaic_0001>

<bundles_post_ra>
// kernel: tpu_custom_call.1
= control target key start
LH: loop header
LB: loop body
LE: loop exit
PB: predicated region body
PF: predicated region fallthrough
CT: control target
= control target key end

     0   :  { %vm30_vm0 = vcmask 261120   ;;  %s228_s1 = inlined_call_operand.vmem [shape: f32[32,32], index: 1, kind: input, shape index: {}]   ;;  %s229_s0 = inlined_call_operand.vmem [shape: f32[64,32], index: 0, kind: input, shape index: {}]   ;;  %s230_s2 = inlined_call_operand.vmem [shape: f32[1,32], index: 2, kind: input, shape index: {}]   ;;  %s231_s3 = inlined_call_operand.vmem [shape: f32[64,32], index: 3, kind: output, shape index: {}]  }
   0x1   :  { %v25_v0 = vld [vmem:[%s228_s1 + $0x18] sm:$0xff]  ;;  %v24_v1 = vld [vmem:[%s228_s1 + $0x10] sm:$0xff]  ;;  %v23_v2 = vld [vmem:[%s228_s1 + $0x8] sm:$0xff] }
   0x2   :  { %117 = vmatpush.msra.mxu2 %v25_v0  ;;  %118 = vmatpush.msra.mxu3 %v25_v0  ;;  %v22_v3 = vld [vmem:[%s228_s1] sm:$0xff]  ;;  %v20_v5 = vld [vmem:[%s229_s0 + $0x30] sm:$0xff]  ;;  %v19_v8 = vld [vmem:[%s229_s0 + $0x28] sm:$0xff] }
   0x3   :  { %67 = vmatpush.msra.mxu0 %v25_v0  ;;  %116 = vmatpush.msra.mxu1 %v25_v0  ;;  %v18_v4 = vld [vmem:[%s229_s0 + $0x20] sm:$0xff]  ;;  %v16_v7 = vld [vmem:[%s229_s0 + $0x10] sm:$0xff]  ;;  %v21_v9 = vld [vmem:[%s229_s0 + $0x38] sm:$0xff] }
   0x4   :  { %120 = vmatpush.msra.mxu2 %v24_v1  ;;  %121 = vmatpush.msra.mxu3 %v24_v1  ;;  %v14_v6 = vld [vmem:[%s229_s0] sm:$0xff]  ;;  %v15_v10 = vld [vmem:[%s229_s0 + $0x8] sm:$0xff]  ;;  %v17_v11 = vld [vmem:[%s229_s0 + $0x18] sm:$0xff] }
   0x5   :  { %68 = vmatpush.msra.mxu0 %v24_v1  ;;  %119 = vmatpush.msra.mxu1 %v24_v1  ;;  %v128_v12 = vld [vmem:[%s230_s2] ss:$0 sm:$0xff] }
   0x6   :  { %123 = vmatpush.msra.mxu2 %v23_v2  ;;  %124 = vmatpush.msra.mxu3 %v23_v2 }
   0x7   :  { %69 = vmatpush.msra.mxu0 %v23_v2  ;;  %122 = vmatpush.msra.mxu1 %v23_v2 }
   0x8   :  { %126 = vmatpush.msra.mxu2 %v22_v3  ;;  %127 = vmatpush.msra.mxu3 %v22_v3 }
   0x9   :  { %112 = vmatmul.msk.f32.vlgmr.msra.gmra.mxu2 %vm30_vm0, %v18_v4  ;;  %114 = vmatmul.msk.f32.vlgmr.msra.gmra.mxu3 %vm30_vm0, %v20_v5 }
   0xa   :  { %70 = vmatpush.msra.mxu0 %v22_v3  ;;  %125 = vmatpush.msra.mxu1 %v22_v3 }
   0xb   :  { %108 = vmatmul.msk.f32.vlgmr.msra.gmra.mxu0 %vm30_vm0, %v14_v6  ;;  %110 = vmatmul.msk.f32.vlgmr.msra.gmra.mxu1 %vm30_vm0, %v16_v7 }
  0x11   :  { %113 = vmatmul.msk.f32.gmra.mxu2 %vm30_vm0, %v19_v8  ;;  %115 = vmatmul.msk.f32.gmra.mxu3 %vm30_vm0, %v21_v9 }
  0x13   :  { %109 = vmatmul.msk.f32.gmra.mxu0 %vm30_vm0, %v15_v10  ;;  %111 = vmatmul.msk.f32.gmra.mxu1 %vm30_vm0, %v17_v11 }
  0x88   :  { %v72_v13 = vpop.f32.mrf.mxu0  ;;  %v78_v14 = vpop.f32.mrf.mxu1 }
  0x89   :  { %v73_v15 = vadd.f32 %v128_v12, %v72_v13  ;;  %v79_v16 = vadd.f32 %v128_v12, %v78_v14 }
  0x8b   :  { %96 = vst.msk [vmem:[%s231_s3] sm:$0xff] %vm30_vm0, %v73_v15 }
  0x8c   :  { %98 = vst.msk [vmem:[%s231_s3 + $0x10] sm:$0xff] %vm30_vm0, %v79_v16  ;;  %v84_v17 = vpop.f32.mrf.mxu2  ;;  %v90_v18 = vpop.f32.mrf.mxu3 }
  0x8d   :  { %v85_v19 = vadd.f32 %v128_v12, %v84_v17  ;;  %v91_v20 = vadd.f32 %v128_v12, %v90_v18 }
  0x8f   :  { %100 = vst.msk [vmem:[%s231_s3 + $0x20] sm:$0xff] %vm30_vm0, %v85_v19 }
  0x90   :  { %102 = vst.msk [vmem:[%s231_s3 + $0x30] sm:$0xff] %vm30_vm0, %v91_v20  ;;  %v75_v21 = vpop.f32.mrf.mxu0  ;;  %v81_v22 = vpop.f32.mrf.mxu1 }
  0x91   :  { %v76_v23 = vadd.f32 %v128_v12, %v75_v21  ;;  %v82_v24 = vadd.f32 %v128_v12, %v81_v22 }
  0x93   :  { %97 = vst.msk [vmem:[%s231_s3 + $0x8] sm:$0xff] %vm30_vm0, %v76_v23 }
  0x94   :  { %99 = vst.msk [vmem:[%s231_s3 + $0x18] sm:$0xff] %vm30_vm0, %v82_v24  ;;  %v87_v25 = vpop.f32.mrf.mxu2  ;;  %v93_v26 = vpop.f32.mrf.mxu3 }
  0x95   :  { %v88_v27 = vadd.f32 %v128_v12, %v87_v25  ;;  %v94_v28 = vadd.f32 %v128_v12, %v93_v26 }
  0x97   :  { %101 = vst.msk [vmem:[%s231_s3 + $0x28] sm:$0xff] %vm30_vm0, %v88_v27 }
  0x98   :  { %103 = vst.msk [vmem:[%s231_s3 + $0x38] sm:$0xff] %vm30_vm0, %v94_v28 }

</bundles_post_ra>
